<compile_context>
chip_gen: v7x
topology: tpu7x:2x2x1
jax: 0.10.0
libtpu: 0.0.40
codegen_flags: <defaults>
</compile_context>

<pallas_src>
import functools

import jax
import jax.numpy as jnp
from jax import lax
from jax.experimental import pallas as pl
from jax.experimental.pallas import tpu as pltpu


def _round_up(x: int, m: int) -> int:
    return ((x + m - 1) // m) * m


def _sym_sm_loss_kernel(msg_ref, rsp_ref, rowp_ref, colp_ref, diag_ref,
                        *, batch, tile, grid_n, rsp_resident):
    i = pl.program_id(0)          # msg row-block   ("parallel")
    j = pl.program_id(1)          # rsp row-block   ("arbitrary", inner / fastest)

    msg_blk = msg_ref[...]                                     # (tile, D), native dtype
    if rsp_resident:
        start = pl.multiple_of(j * tile, tile)
        rsp_blk = rsp_ref[pl.ds(start, tile), :]                # slice of resident rsp
    else:
        rsp_blk = rsp_ref[...]                                  # (tile, D)

    # s[r, c] = msg_blk[r] . rsp_blk[c]; contract D directly (no rsp transpose).
    s = lax.dot_general(msg_blk, rsp_blk,
                        dimension_numbers=(((1,), (1,)), ((), ())),
                        preferred_element_type=jnp.float32)     # (tile, tile) f32

    padded = tile * grid_n > batch            # static Python bool
    if padded:
        neg = jnp.float32(-1e30)
        col_bias = jnp.where(
            (j * tile + lax.broadcasted_iota(jnp.int32, (1, tile), 1)) < batch,
            jnp.float32(0.0), neg)                              # (1, tile)
        row_bias = jnp.where(
            (i * tile + lax.broadcasted_iota(jnp.int32, (tile, 1), 0)) < batch,
            jnp.float32(0.0), neg)                              # (tile, 1)
        s = s + col_bias + row_bias        # padded rows/cols -> ~-1e30, exp -> 0

    # True per-row max (needed for P@1) doubles as the path to the block max.
    row_max = jnp.max(s, axis=1, keepdims=True)                 # (tile, 1) lane reduce
    m_blk = jnp.max(row_max, axis=0, keepdims=True)             # (1, 1) block reference

    # Single exp pass per Gram element; row AND column partial sums reuse it.
    p = jnp.exp(s - m_blk)                                      # (tile, tile)
    row_sum = jnp.sum(p, axis=1, keepdims=True)                 # (tile, 1)
    col_sum = jnp.sum(p, axis=0, keepdims=True)                 # (1, tile)

    rowp_ref[:, 0:1] = row_sum
    rowp_ref[:, 1:2] = row_max
    colp_ref[0:1, :] = col_sum
    colp_ref[1:2, :] = jnp.zeros((1, tile), jnp.float32) + m_blk

    # Diagonal block: diag(s) == s_x_y for this block's rows (MXU-consistent).
    @pl.when(i == j)
    def _():
        eye = (lax.broadcasted_iota(jnp.int32, (tile, tile), 0)
               == lax.broadcasted_iota(jnp.int32, (tile, tile), 1))
        diag_ref[...] = jnp.sum(jnp.where(eye, s, 0.0), axis=0, keepdims=True)


def sym_sm_loss(msg_enc: jax.Array, rsp_enc: jax.Array, *,
                block_b: int = 256, rsp_resident=None):
    """Pallas implementation of SymSMLoss.forward.

    Args:
        msg_enc, rsp_enc: [batch, dim] arrays (f32 or bf16).
        block_b: batch tile size (256 suits v6e/v7x; try 512 on v5e/v6e).
        rsp_resident: force/disable keeping the full rsp matrix resident in VMEM.
    Returns:
        {'loss': [batch] f32, 'precision': scalar f32}
    """
    assert msg_enc.shape == rsp_enc.shape and msg_enc.ndim == 2
    B, D = msg_enc.shape
    itemsize = jnp.dtype(msg_enc.dtype).itemsize
    sub = 8 if itemsize >= 4 else (16 if itemsize == 2 else 32)   # sublane packing

    if B <= block_b:
        tile = _round_up(max(B, 1), sub)
        b_pad = tile
    else:
        tile = _round_up(block_b, sub)
        b_pad = _round_up(B, tile)
    grid_n = b_pad // tile

    if b_pad != B:
        pad = b_pad - B
        msg_p = jnp.pad(msg_enc, ((0, pad), (0, 0)))
        rsp_p = jnp.pad(rsp_enc, ((0, pad), (0, 0)))
    else:
        msg_p, rsp_p = msg_enc, rsp_enc

    rsp_bytes = b_pad * D * itemsize
    if rsp_resident is None:
        # Keep rsp resident in VMEM when it comfortably fits: removes the grid_n-fold
        # HBM re-read of rsp (largest lever on v5e's lower HBM bandwidth).
        rsp_resident = grid_n > 1 and rsp_bytes <= 12 * 1024 * 1024
    rsp_resident = bool(rsp_resident) and grid_n > 1

    if rsp_resident:
        rsp_spec = pl.BlockSpec((b_pad, D), lambda i, j: (0, 0))
    else:
        rsp_spec = pl.BlockSpec((tile, D), lambda i, j: (j, 0))

    kernel = functools.partial(_sym_sm_loss_kernel, batch=B, tile=tile,
                               grid_n=grid_n, rsp_resident=rsp_resident)

    # VMEM budget: double-buffered msg tile (+ rsp tile or resident rsp) + tile^2
    # f32 intermediates + headroom; capped below v7x's 64 MiB physical VMEM.
    vmem_est = (2 * tile * D * itemsize
                + (2 * rsp_bytes if rsp_resident else 2 * tile * D * itemsize)
                + 8 * tile * tile * 4)
    vmem_limit = int(min(max(32 * 1024 * 1024, 2 * vmem_est), 56 * 1024 * 1024))

    rsp_reads = 1 if rsp_resident else grid_n
    rowp, colp, diag = pl.pallas_call(
        kernel,
        grid=(grid_n, grid_n),
        in_specs=[
            pl.BlockSpec((tile, D), lambda i, j: (i, 0)),       # msg: resident over j
            rsp_spec,                                           # rsp: streamed or resident
        ],
        out_specs=(
            pl.BlockSpec((None, None, tile, 2), lambda i, j: (i, j, 0, 0)),
            pl.BlockSpec((None, None, 2, tile), lambda i, j: (i, j, 0, 0)),
            pl.BlockSpec((None, 1, tile), lambda i, j: (i, 0, 0)),
        ),
        out_shape=(
            jax.ShapeDtypeStruct((grid_n, grid_n, tile, 2), jnp.float32),  # row partials
            jax.ShapeDtypeStruct((grid_n, grid_n, 2, tile), jnp.float32),  # col partials + blk max
            jax.ShapeDtypeStruct((grid_n, 1, tile), jnp.float32),          # diag == s_x_y
        ),
        compiler_params=pltpu.CompilerParams(
            dimension_semantics=("parallel", "arbitrary"),      # v7x megacore splits i
            vmem_limit_bytes=vmem_limit,
        ),
        cost_estimate=pl.CostEstimate(
            flops=2 * b_pad * b_pad * D,
            transcendentals=b_pad * b_pad,                      # one exp per Gram element
            bytes_accessed=(1 + rsp_reads) * b_pad * D * itemsize
                           + 4 * (3 * grid_n * b_pad + b_pad),
        ),
    )(msg_p, rsp_p)

    # ---- tiny O(grid_n * batch) merge / finalize in plain JAX ----
    G, T = grid_n, tile
    row_sum_p = rowp[..., 0]              # (G, G, T)  per-block row sums of exp(s - m_b)
    row_max_p = rowp[..., 1]              # (G, G, T)  per-block true row maxes of s
    col_sum_p = colp[:, :, 0, :]          # (G, G, T)  per-block column sums
    m_b = colp[:, :, 1, 0]                # (G, G)     per-block reference maxes

    m_row = jnp.max(m_b, axis=1)          # (G,)
    m_col = jnp.max(m_b, axis=0)          # (G,)
    s_row = jnp.einsum('ij,ijq->iq', jnp.exp(m_b - m_row[:, None]), row_sum_p)  # (G, T)
    s_col = jnp.einsum('ij,ijq->jq', jnp.exp(m_b - m_col[None, :]), col_sum_p)  # (G, T)

    m_fin = jnp.maximum(m_row, m_col)     # (G,)   (row-block g pairs with col-block g)
    total = (s_row * jnp.exp(m_row - m_fin)[:, None]
             + s_col * jnp.exp(m_col - m_fin)[:, None])                          # (G, T)

    diag_flat = diag[:, 0, :].reshape(-1)[:B]
    total_flat = total.reshape(-1)[:B]
    m_flat = jnp.broadcast_to(m_fin[:, None], (G, T)).reshape(-1)[:B]
    loss = m_flat + jnp.log(total_flat) - diag_flat

    # argmax(s_x, dim=1) == row index  <=>  the diagonal equals the true row max.
    # (Ties count as correct; PyTorch argmax picks the first index — negligible in float.)
    row_max_flat = jnp.max(row_max_p, axis=1).reshape(-1)[:B]
    precision = jnp.mean((diag_flat >= row_max_flat).astype(jnp.float32))

    return {"loss": loss, "precision": precision}


def _reference(msg_enc, rsp_enc):
    """Pure-JAX reference mirroring the PyTorch SymSMLoss forward."""
    msg = msg_enc.astype(jnp.float32)
    rsp = rsp_enc.astype(jnp.float32)
    s_x_y = jnp.sum(msg * rsp, axis=1)
    s_x = msg @ rsp.T
    s_y = rsp @ msg.T
    cat = jnp.concatenate([s_x, s_y], axis=1)
    lse = jax.scipy.special.logsumexp(cat, axis=1)
    loss = lse - s_x_y
    precision = jnp.mean(
        (jnp.argmax(s_x, axis=1) == jnp.arange(s_x.shape[0])).astype(jnp.float32))
    return loss, precision


if __name__ == "__main__":
    key = jax.random.PRNGKey(0)
    k1, k2, k3, k4 = jax.random.split(key, 4)

    # Case 1: small batch, single block, no padding.
    B1, D1 = 8, 32
    msg1 = jax.random.normal(k1, (B1, D1), dtype=jnp.float32)
    rsp1 = jax.random.normal(k2, (B1, D1), dtype=jnp.float32)
    out1 = sym_sm_loss(msg1, rsp1)
    jax.block_until_ready(out1)
    ref_loss1, ref_prec1 = _reference(msg1, rsp1)
    assert out1["loss"].shape == (B1,)
    assert jnp.allclose(out1["loss"], ref_loss1, atol=5e-4, rtol=5e-4)
    assert jnp.allclose(out1["precision"], ref_prec1, atol=1e-6)

    # Case 2: multi-block grid + padding/masking path (tile=8, G=3), rsp resident in VMEM.
    B2, D2 = 20, 32
    msg2 = jax.random.normal(k3, (B2, D2), dtype=jnp.float32)
    rsp2 = jax.random.normal(k4, (B2, D2), dtype=jnp.float32)
    out2 = sym_sm_loss(msg2, rsp2, block_b=8)
    jax.block_until_ready(out2)
    ref_loss2, ref_prec2 = _reference(msg2, rsp2)
    assert out2["loss"].shape == (B2,)
    assert jnp.allclose(out2["loss"], ref_loss2, atol=5e-4, rtol=5e-4)
    assert jnp.allclose(out2["precision"], ref_prec2, atol=1e-6)

    # Case 3: same inputs, streamed (non-resident) rsp path.
    out3 = sym_sm_loss(msg2, rsp2, block_b=8, rsp_resident=False)
    jax.block_until_ready(out3)
    assert jnp.allclose(out3["loss"], ref_loss2, atol=5e-4, rtol=5e-4)
    assert jnp.allclose(out3["precision"], ref_prec2, atol=1e-6)

    print("KERNEL_OK")
</pallas_src>

<mosaic_0001>
module attributes {stable_mosaic.version = 11 : i64} {
  func.func @_sym_sm_loss_kernel(%arg0: i32, %arg1: i32, %arg2: memref<8x32xf32, #tpu.memory_space<vmem>>, %arg3: memref<8x32xf32, #tpu.memory_space<vmem>>, %arg4: memref<1x1x8x2xf32, #tpu.memory_space<vmem>>, %arg5: memref<1x1x2x8xf32, #tpu.memory_space<vmem>>, %arg6: memref<1x1x8xf32, #tpu.memory_space<vmem>>) attributes {dimension_semantics = [#tpu.dimension_semantics<parallel>, #tpu.dimension_semantics<arbitrary>], iteration_bounds = array<i64: 1, 1>, scalar_prefetch = 0 : i64, scratch_operands = 0 : i64, tpu.core_type = #tpu.core_type<tc>, window_params = [{transform_indices = @transform_0, window_bounds = array<i64: 8, 32>}, {transform_indices = @transform_1, window_bounds = array<i64: 8, 32>}, {transform_indices = @transform_2, window_bounds = array<i64: 1, 1, 8, 2>}, {transform_indices = @transform_3, window_bounds = array<i64: 1, 1, 2, 8>}, {transform_indices = @transform_4, window_bounds = array<i64: 1, 1, 8>}]} {
    %c0 = arith.constant 0 : index
    %c0_0 = arith.constant 0 : index
    %0 = vector.load %arg2[%c0, %c0_0] : memref<8x32xf32, #tpu.memory_space<vmem>>, vector<8x32xf32>
    %c0_1 = arith.constant 0 : index
    %c0_2 = arith.constant 0 : index
    %1 = vector.load %arg3[%c0_1, %c0_2] : memref<8x32xf32, #tpu.memory_space<vmem>>, vector<8x32xf32>
    %cst = arith.constant dense<0.000000e+00> : vector<8x8xf32>
    %2 = tpu.matmul %0, %1, %cst {dimension_numbers = #tpu.dot_dimension_numbers<[1], [1], [0], [0], [0, 0, 1, 0], [], []>} : vector<8x32xf32>, vector<8x32xf32>, vector<8x8xf32> -> vector<8x8xf32>
    %cst_3 = arith.constant dense<0xFF800000> : vector<8xf32>
    %3 = vector.multi_reduction <maximumf>, %2, %cst_3 [1] : vector<8x8xf32> to vector<8xf32>
    %4 = vector.shape_cast %3 : vector<8xf32> to vector<8x1xf32>
    %cst_4 = arith.constant dense<0xFF800000> : vector<1xf32>
    %5 = vector.multi_reduction <maximumf>, %4, %cst_4 [0] : vector<8x1xf32> to vector<1xf32>
    %6 = vector.shape_cast %5 : vector<1xf32> to vector<1x1xf32>
    %7 = vector.broadcast %6 : vector<1x1xf32> to vector<8x8xf32>
    %8 = arith.subf %2, %7 : vector<8x8xf32>
    %9 = math.exp %8 : vector<8x8xf32>
    %cst_5 = arith.constant dense<0.000000e+00> : vector<8xf32>
    %10 = vector.multi_reduction <add>, %9, %cst_5 [1] : vector<8x8xf32> to vector<8xf32>
    %11 = vector.shape_cast %10 : vector<8xf32> to vector<8x1xf32>
    %cst_6 = arith.constant dense<0.000000e+00> : vector<8xf32>
    %12 = vector.multi_reduction <add>, %9, %cst_6 [0] : vector<8x8xf32> to vector<8xf32>
    %13 = vector.shape_cast %12 : vector<8xf32> to vector<1x8xf32>
    %c0_7 = arith.constant 0 : index
    %c0_8 = arith.constant 0 : index
    %c0_9 = arith.constant 0 : index
    %c0_10 = arith.constant 0 : index
    %14 = vector.load %arg4[%c0_7, %c0_8, %c0_9, %c0_10] : memref<1x1x8x2xf32, #tpu.memory_space<vmem>>, vector<1x1x8x1xf32>
    %15 = vector.shape_cast %14 : vector<1x1x8x1xf32> to vector<8x1xf32>
    %16 = vector.shape_cast %11 : vector<8x1xf32> to vector<1x1x8x1xf32>
    tpu.vector_store %arg4[%c0_7, %c0_8, %c0_9, %c0_10], %16 {strides = array<i32>} : memref<1x1x8x2xf32, #tpu.memory_space<vmem>>, vector<1x1x8x1xf32>,
    %c0_11 = arith.constant 0 : index
    %c0_12 = arith.constant 0 : index
    %c0_13 = arith.constant 0 : index
    %c1 = arith.constant 1 : index
    %17 = vector.load %arg4[%c0_11, %c0_12, %c0_13, %c1] : memref<1x1x8x2xf32, #tpu.memory_space<vmem>>, vector<1x1x8x1xf32>
    %18 = vector.shape_cast %17 : vector<1x1x8x1xf32> to vector<8x1xf32>
    %19 = vector.shape_cast %4 : vector<8x1xf32> to vector<1x1x8x1xf32>
    tpu.vector_store %arg4[%c0_11, %c0_12, %c0_13, %c1], %19 {strides = array<i32>} : memref<1x1x8x2xf32, #tpu.memory_space<vmem>>, vector<1x1x8x1xf32>,
    %c0_14 = arith.constant 0 : index
    %c0_15 = arith.constant 0 : index
    %c0_16 = arith.constant 0 : index
    %c0_17 = arith.constant 0 : index
    %20 = vector.load %arg5[%c0_14, %c0_15, %c0_16, %c0_17] : memref<1x1x2x8xf32, #tpu.memory_space<vmem>>, vector<1x1x1x8xf32>
    %21 = vector.shape_cast %20 : vector<1x1x1x8xf32> to vector<1x8xf32>
    %22 = vector.shape_cast %13 : vector<1x8xf32> to vector<1x1x1x8xf32>
    tpu.vector_store %arg5[%c0_14, %c0_15, %c0_16, %c0_17], %22 {strides = array<i32>} : memref<1x1x2x8xf32, #tpu.memory_space<vmem>>, vector<1x1x1x8xf32>,
    %cst_18 = arith.constant 0.000000e+00 : f32
    %23 = vector.broadcast %cst_18 : f32 to vector<1x8xf32>
    %24 = vector.broadcast %6 : vector<1x1xf32> to vector<1x8xf32>
    %25 = arith.addf %23, %24 : vector<1x8xf32>
    %c0_19 = arith.constant 0 : index
    %c0_20 = arith.constant 0 : index
    %c1_21 = arith.constant 1 : index
    %c0_22 = arith.constant 0 : index
    %26 = vector.load %arg5[%c0_19, %c0_20, %c1_21, %c0_22] : memref<1x1x2x8xf32, #tpu.memory_space<vmem>>, vector<1x1x1x8xf32>
    %27 = vector.shape_cast %26 : vector<1x1x1x8xf32> to vector<1x8xf32>
    %28 = vector.shape_cast %25 : vector<1x8xf32> to vector<1x1x1x8xf32>
    tpu.vector_store %arg5[%c0_19, %c0_20, %c1_21, %c0_22], %28 {strides = array<i32>} : memref<1x1x2x8xf32, #tpu.memory_space<vmem>>, vector<1x1x1x8xf32>,
    %29 = arith.cmpi eq, %arg0, %arg1 : i32
    %30 = arith.extui %29 : i1 to i32
    %c0_i32 = arith.constant 0 : i32
    %31 = arith.cmpi ne, %30, %c0_i32 : i32
    scf.if %31 {
      %32 = tpu.iota {dimensions = array<i32: 0>} : vector<8x8xi32>
      %33 = tpu.iota {dimensions = array<i32: 1>} : vector<8x8xi32>
      %34 = arith.cmpi eq, %32, %33 : vector<8x8xi32>
      %cst_23 = arith.constant 0.000000e+00 : f32
      %35 = vector.broadcast %cst_23 : f32 to vector<8x8xf32>
      %36 = arith.select %34, %2, %35 : vector<8x8xi1>, vector<8x8xf32>
      %cst_24 = arith.constant dense<0.000000e+00> : vector<8xf32>
      %37 = vector.multi_reduction <add>, %36, %cst_24 [0] : vector<8x8xf32> to vector<8xf32>
      %38 = vector.shape_cast %37 : vector<8xf32> to vector<1x8xf32>
      %c0_25 = arith.constant 0 : index
      %c0_26 = arith.constant 0 : index
      %c0_27 = arith.constant 0 : index
      %39 = vector.load %arg6[%c0_25, %c0_26, %c0_27] : memref<1x1x8xf32, #tpu.memory_space<vmem>>, vector<1x1x8xf32>
      %40 = vector.shape_cast %39 : vector<1x1x8xf32> to vector<1x8xf32>
      %41 = vector.shape_cast %38 : vector<1x8xf32> to vector<1x1x8xf32>
      tpu.vector_store %arg6[%c0_25, %c0_26, %c0_27], %41 {strides = array<i32>} : memref<1x1x8xf32, #tpu.memory_space<vmem>>, vector<1x1x8xf32>,
    } else {
    }
    return
  }
  func.func @transform_0(%arg0: i32, %arg1: i32) -> (i32, i32) {
    %c0_i32 = arith.constant 0 : i32
    %c0_i32_0 = arith.constant 0 : i32
    return %arg0, %c0_i32 : i32, i32
  }
  func.func @transform_1(%arg0: i32, %arg1: i32) -> (i32, i32) {
    %c0_i32 = arith.constant 0 : i32
    %c0_i32_0 = arith.constant 0 : i32
    return %arg1, %c0_i32 : i32, i32
  }
  func.func @transform_2(%arg0: i32, %arg1: i32) -> (i32, i32, i32, i32) {
    %c0_i32 = arith.constant 0 : i32
    %c0_i32_0 = arith.constant 0 : i32
    %c0_i32_1 = arith.constant 0 : i32
    return %arg0, %arg1, %c0_i32, %c0_i32_0 : i32, i32, i32, i32
  }
  func.func @transform_3(%arg0: i32, %arg1: i32) -> (i32, i32, i32, i32) {
    %c0_i32 = arith.constant 0 : i32
    %c0_i32_0 = arith.constant 0 : i32
    %c0_i32_1 = arith.constant 0 : i32
    return %arg0, %arg1, %c0_i32, %c0_i32_0 : i32, i32, i32, i32
  }
  func.func @transform_4(%arg0: i32, %arg1: i32) -> (i32, i32, i32) {
    %c0_i32 = arith.constant 0 : i32
    %c0_i32_0 = arith.constant 0 : i32
    %c0_i32_1 = arith.constant 0 : i32
    return %arg0, %c0_i32, %c0_i32_0 : i32, i32, i32
  }
}

</mosaic_0001>

<bundles_post_ra>
// kernel: tpu_custom_call.1
= control target key start
LH: loop header
LB: loop body
LE: loop exit
PB: predicated region body
PF: predicated region fallthrough
CT: control target
= control target key end

     0   :  { %10 = vsyncpa [#allocation3], 0  ;;  %s405_s0 = inlined_call_operand.hbm [shape: f32[8,32], index: 0, kind: input, shape index: {}]   ;;  %s406_s1 = inlined_call_operand.hbm [shape: f32[8,32], index: 1, kind: input, shape index: {}]   ;;  %s407_s2 = inlined_call_operand.vmem [shape: f32[1,1,8,2], index: 2, kind: output, shape index: {0}]   ;;  %s408_s3 = inlined_call_operand.hbm [shape: f32[1,1,2,8], index: 3, kind: output, shape index: {1}]   ;;  %s409_s4 = inlined_call_operand.hbm [shape: f32[1,1,8], index: 4, kind: output, shape index: {2}]  }
   0x1   :  { %11 = vsyncpa [#allocation6], 0 }
   0x2   :  { %12 = vsyncpa [#allocation4], 0 }
   0x3   :  { %13 = vsyncpa [#allocation9], 0  ;;  %s314_s15 = smov [#allocation2]   ;;  %s315_s17 = smov [#allocation5]  }
   0x4   :  { %s20_s16 = sshll.u32 %s314_s15, 4  ;;  %s30_s18 = sshll.u32 %s315_s17, 4  ;;  %s21_s16 = int_to_ptr.vmem [resolvable:$true] %s20_s16  ;;  %s31_s18 = int_to_ptr.vmem [resolvable:$true] %s30_s18 }
   0x5   :  { %s218_s21 = scalar_lea.hbm %s405_s0, 128 }
   0x6   :  { %p219_p0 = scmp.ne.s32.totalorder %s405_s0, %s218_s21  ;;  %p222_p1 = scmp.lt.u32.totalorder %s218_s21, %s405_s0 }
   0x8   :  { %p224_p2 = pnand %p222_p1, %p219_p0 }
   0xa   :  { %227 = shalt.err (!%p224_p2)
}
   0xb   :  { %s228_s26 = scalar_lea.vmem %s21_s16, 128  ;;  %p233_p4 = scmp.lt.s32.totalorder %s21_s16, %s21_s16 }
   0xc   :  { %p229_p3 = scmp.ne.s32.totalorder %s21_s16, %s228_s26  ;;  %p234_p5 = scmp.lt.s32.totalorder %s228_s26, %s228_s26 }
   0xe   :  { %p235_p6 = por %p234_p5, %p233_p4 }
  0x10   :  { %p236_p7 = pnand %p235_p6, %p229_p3 }
  0x12   :  { %239 = shalt.err (!%p236_p7)
}
  0x13   :  { %23 = dma.hbm_to_vmem [thread:$0]  %s405_s0, 128, %s21_s16, [#allocation3]  }
  0x14   :  { %s240_s5 = scalar_lea.hbm %s406_s1, 128 }
  0x15   :  { %p241_p8 = scmp.ne.s32.totalorder %s406_s1, %s240_s5  ;;  %p244_p9 = scmp.lt.u32.totalorder %s240_s5, %s406_s1 }
  0x17   :  { %p246_p10 = pnand %p244_p9, %p241_p8 }
  0x19   :  { %249 = shalt.err (!%p246_p10)
}
  0x1a   :  { %s250_s10 = scalar_lea.vmem %s31_s18, 128  ;;  %p255_p12 = scmp.lt.s32.totalorder %s31_s18, %s31_s18 }
  0x1b   :  { %p251_p11 = scmp.ne.s32.totalorder %s31_s18, %s250_s10  ;;  %p256_p13 = scmp.lt.s32.totalorder %s250_s10, %s250_s10 }
  0x1d   :  { %p257_p0 = por %p256_p13, %p255_p12 }
  0x1f   :  { %p258_p1 = pnand %p257_p0, %p251_p11 }
  0x21   :  { %261 = shalt.err (!%p258_p1)
}
  0x22   :  { %33 = dma.hbm_to_vmem [thread:$0]  %s406_s1, 128, %s31_s18, [#allocation6]  }
  0x23   :  { %306 = dma.done.wait [#allocation3], 128  }
  0x24   :  { %307 = vsyncadd [#allocation3], 4294967168 }
  0x25   :  { %308 = dma.done.wait [#allocation6], 128  }
  0x26   :  { %309 = vsyncadd [#allocation6], 4294967168  ;;  %v316_v0 = vmov 0.0   ;;  %vm317_vm0 = vmmov 0   ;;  %vm42_vm1 = vcmask 261120   ;;  %v41_v1 = vld [vmem:[#allocation5] sm:$0xff]  ;;  %v153_v3 = vlaneseq }
  0x27   :  { %205 = vmatprep.subr.mxu0 %v316_v0  ;;  %207 = vmatprep.mubr.msk.f32.mxu0 %vm317_vm0, %v316_v0  ;;  %v40_v2 = vld [vmem:[#allocation2] sm:$0xff]  ;;  %vm119_vm3 = vcmask 64512   ;;  %vm145_vm4 = vcmask 57344   ;;  %s318_s1 = smov [#allocation7]   ;;  %s319_s13 = smov [#allocation8]  }
  0x28   :  { %206 = vmatpush3.xpose.msk.msra.mxu0 %vm42_vm1, %v41_v1  ;;  %v154_v4 = vshrl.u32 %v153_v3, 7  ;;  %v156_v5 = vand.u32 127, %v153_v3  ;;  %s175_s12 = sshll.u32 %s318_s1, 4  ;;  %s185_s14 = sshll.u32 %s319_s13, 4  ;;  %s176_s12 = int_to_ptr.vmem [resolvable:$true] %s175_s12  ;;  %s186_s14 = int_to_ptr.vmem [resolvable:$true] %s185_s14 }
  0x29   :  { %s262_s15 = scalar_lea.vmem %s176_s12, 32  ;;  %p267_p3 = scmp.lt.s32.totalorder %s176_s12, %s176_s12 }
  0x2a   :  { %vm157_vm2 = vcmp.eq.s32.totalorder %v154_v4, %v156_v5  ;;  %p263_p2 = scmp.ne.s32.totalorder %s176_s12, %s262_s15  ;;  %p268_p4 = scmp.lt.s32.totalorder %s262_s15, %s262_s15 }
  0x2b   :  { %208 = vmatmul.mubr.msk.f32.vlgmr.msra.gmra.mrb[0].mxu0 %vm42_vm1, %v40_v2 }
  0x2c   :  { %p269_p5 = por %p268_p4, %p267_p3 }
  0x2e   :  { %p270_p6 = pnand %p269_p5, %p263_p2 }
  0xfe   :  { %v115_v6 = vpop.f32.mrb[0].mxu0 }
  0xff   :  { %v158_v7 = vsel %vm157_vm2, %v115_v6, 0.0  ;;  %v209_v8 = vpop.f32.mrb[1].mxu0  ;;  %v120_v9 = vsel %vm119_vm3, %v115_v6, -inf }
 0x100   :  { %v159_v10 = vsel %vm119_vm3, %v158_v7, 0.0  ;;  %121 = vmax.xlane.f32.xlu0 %v120_v9 }
 0x101   :  { %v160_v11 = vrot.slane %v159_v10, 4 }
 0x103   :  { %v161_v12 = vadd.f32 %v160_v11, %v159_v10 }
 0x105   :  { %v162_v13 = vrot.slane %v161_v12, 2 }
 0x107   :  { %v163_v14 = vadd.f32 %v162_v13, %v161_v12 }
 0x109   :  { %v164_v15 = vrot.slane %v163_v14, 1 }
 0x10b   :  { %v165_v16 = vadd.f32 %v164_v15, %v163_v14 }
 0x10d   :  { %166 = vst.msk [vmem:[#allocation8] sm:$0x1] %vm145_vm4, %v165_v16 }
 0x18d   :  { %v122_v17 = vpop.xlane.xlu0 %121 }
 0x18e   :  { %v123_v18 = vrot.slane %v122_v17, 4 }
 0x190   :  { %v124_v19 = vmax.f32 %v122_v17, %v123_v18 }
 0x192   :  { %v125_v20 = vrot.slane %v124_v19, 2 }
 0x194   :  { %v126_v21 = vmax.f32 %v124_v19, %v125_v20 }
 0x196   :  { %v127_v22 = vrot.slane %v126_v21, 1 }
 0x198   :  { %v128_v23 = vmax.f32 %v126_v21, %v127_v22 }
 0x19a   :  { %v129_v24 = vsub.f32 %v115_v6, %v128_v23  ;;  %148 = vst.msk [vmem:[#allocation7 + $0x1] sm:$0x1] %vm145_vm4, %v128_v23 }
 0x19c   :  { %v130_v25 = vmul.f32 1.442695, %v129_v24 }
 0x19e   :  { %216 = vpow2.f32 %v130_v25 }
 0x1a8   :  { %v217_v26 = vpop.eup %216 }
 0x1a9   :  { %v132_v27 = vsel %vm119_vm3, %v217_v26, 0.0 }
 0x1aa   :  { %133 = vadd.xlane.f32.xlu0 %v132_v27  ;;  %v135_v28 = vrot.slane %v132_v27, 4 }
 0x1ac   :  { %v136_v29 = vadd.f32 %v135_v28, %v132_v27 }
 0x1ae   :  { %v137_v30 = vrot.slane %v136_v29, 2 }
 0x1b0   :  { %v138_v31 = vadd.f32 %v137_v30, %v136_v29 }
 0x1b2   :  { %v139_v32 = vrot.slane %v138_v31, 1 }
 0x1b4   :  { %v140_v33 = vadd.f32 %v139_v32, %v138_v31 }
 0x1b6   :  { %146 = vst.msk [vmem:[#allocation7] sm:$0x1] %vm145_vm4, %v140_v33 }
 0x1b7   :  { %273 = shalt.err (!%p270_p6)
}
 0x1b8   :  { %s274_s18 = scalar_lea.hbm %s408_s3, 32 }
 0x1b9   :  { %p275_p7 = scmp.ne.s32.totalorder %s408_s3, %s274_s18  ;;  %p278_p8 = scmp.lt.u32.totalorder %s274_s18, %s408_s3 }
 0x1bb   :  { %p280_p9 = pnand %p278_p8, %p275_p7 }
 0x1bd   :  { %283 = shalt.err (!%p280_p9)
}
 0x1be   :  { %178 = dma.vmem_to_hbm [thread:$0]  %s176_s12, 32, %s408_s3, [#allocation4]  }
 0x1bf   :  { %s284_s25 = scalar_lea.vmem %s186_s14, 16  ;;  %s288_s26 = scalar_lea.vmem %s186_s14, 32 }
 0x1c0   :  { %p285_p10 = scmp.ne.s32.totalorder %s186_s14, %s284_s25  ;;  %p289_p11 = scmp.lt.s32.totalorder %s186_s14, %s186_s14 }
 0x1c1   :  { %p290_p12 = scmp.lt.s32.totalorder %s288_s26, %s284_s25 }
 0x1c3   :  { %p291_p13 = por %p290_p12, %p289_p11 }
 0x1c5   :  { %p292_p0 = pnand %p291_p13, %p285_p10 }
 0x1c7   :  { %295 = shalt.err (!%p292_p0)
}
 0x1c8   :  { %s296_s29 = scalar_lea.hbm %s409_s4, 16 }
 0x1c9   :  { %p297_p1 = scmp.ne.s32.totalorder %s409_s4, %s296_s29  ;;  %p300_p2 = scmp.lt.u32.totalorder %s296_s29, %s409_s4 }
 0x1cb   :  { %p302_p3 = pnand %p300_p2, %p297_p1 }
 0x1cd   :  { %305 = shalt.err (!%p302_p3)
}
 0x1ce   :  { %188 = dma.vmem_to_hbm [thread:$0]  %s186_s14, 16, %s409_s4, [#allocation9]   ;;  %vm141_vm5 = vcmask 7168   ;;  %vm143_vm6 = vcmask 15368  }
 0x237   :  { %v134_v34 = vpop.xlane.xlu0 %133 }
 0x238   :  { %142 = vst.msk [vmem:[%s407_s2] sm:$0xff] %vm141_vm5, %v134_v34 }
 0x239   :  { %144 = vst.msk [vmem:[%s407_s2] sm:$0xff] %vm143_vm6, %v122_v17 }
 0x23a   :  { %310 = dma.done.wait [#allocation4], 32  }
 0x23b   :  { %311 = vsyncadd [#allocation4], 4294967264 }
 0x23c   :  { %312 = dma.done.wait [#allocation9], 16  }
 0x23d   :  { %313 = vsyncadd [#allocation9], 4294967280 }
 0x23e   :  { %197 = vsyncpa [#allocation3], 1 }
 0x23f   :  { %198 = vsyncpa [#allocation6], 1 }
 0x240   :  { %199 = vsyncpa [#allocation4], 1 }
 0x241   :  { %200 = vsyncpa [#allocation9], 1 }

</bundles_post_ra>
